<compile_context>
chip_gen: v6e
topology: v6e:2x2x1
jax: 0.10.0
libtpu: 0.0.40
codegen_flags: <defaults>
</compile_context>

<pallas_src>
import functools

import numpy as np
import jax
import jax.numpy as jnp
from jax.experimental import pallas as pl
from jax.experimental.pallas import tpu as pltpu


# ----------------------------------------------------------------------------
# config
# ----------------------------------------------------------------------------
PATCH = 4
C_FEAT = 128                       # lane-dense feature width (multiple of 128)
TASKS = ("semseg", "depth")
TASK_CHANNELS = {"semseg": 5, "depth": 1}
N_ROUTE = len(TASKS)
CH_TASK = sum(TASK_CHANNELS[t] for t in TASKS)      # 6
CH_TOTAL = CH_TASK + N_ROUTE                         # 8 (no 128-lane padding)
TM_MAX = 1024                      # max M tile for the fused backbone+heads
TH_MAX = 128                       # max H_out tile for the fused upsample


def _round_up(x, m):
    return (x + m - 1) // m * m


def _pick_m_tile(m, max_tile=TM_MAX, align=16):
    """16-aligned (bf16 sublane packing) M tile close to M (no dead tile)."""
    m_al = _round_up(m, align)
    if m_al <= max_tile:
        return m_al
    n_tiles = -(-m_al // max_tile)                    # cdiv
    return _round_up(-(-m_al // n_tiles), align)


def _pick_h_tile(h_out, max_tile=TH_MAX):
    """8-aligned divisor of H_out (bounds per-step VMEM), or H_out itself."""
    if h_out <= max_tile:
        return h_out
    for t in range(max_tile, 7, -1):
        if h_out % t == 0 and t % 8 == 0:
            return t
    return h_out


# ----------------------------------------------------------------------------
# Pallas kernel 1: fused backbone patch-embed + all task/route heads.
#   fused = relu(x @ Wb + bb) @ Wh + bh   computed per M tile; Wb/Wh resident.
# ----------------------------------------------------------------------------
def _backbone_heads_kernel(x_ref, wb_ref, bb_ref, wh_ref, bh_ref, o_ref):
    feats = jnp.dot(x_ref[...], wb_ref[...],
                    preferred_element_type=jnp.float32)       # (tm, C_FEAT) f32
    feats = jnp.maximum(feats + bb_ref[...], 0.0)
    fused = jnp.dot(feats.astype(jnp.bfloat16), wh_ref[...],
                    preferred_element_type=jnp.float32)       # (tm, CH_TOTAL)
    o_ref[...] = (fused + bh_ref[...]).astype(o_ref.dtype)


def fused_backbone_heads(x_patches_bf16, wb, bb, wh, bh):
    """x: (M, K) bf16, wb: (K, C_FEAT) bf16, wh: (C_FEAT, CH_TOTAL) bf16.

    Returns (M, CH_TOTAL) f32: per-pixel task logits + per-pixel route logits.
    """
    M, K = x_patches_bf16.shape
    tm = _pick_m_tile(M)
    M_pad = _round_up(M, tm)
    x = x_patches_bf16
    if M_pad != M:
        x = jnp.pad(x, ((0, M_pad - M), (0, 0)))

    out = pl.pallas_call(
        _backbone_heads_kernel,
        out_shape=jax.ShapeDtypeStruct((M_pad, CH_TOTAL), jnp.float32),
        grid=(M_pad // tm,),
        in_specs=[
            pl.BlockSpec((tm, K), lambda i: (i, 0)),
            pl.BlockSpec((K, C_FEAT), lambda i: (0, 0)),
            pl.BlockSpec((1, C_FEAT), lambda i: (0, 0)),
            pl.BlockSpec((C_FEAT, CH_TOTAL), lambda i: (0, 0)),
            pl.BlockSpec((1, CH_TOTAL), lambda i: (0, 0)),
        ],
        out_specs=pl.BlockSpec((tm, CH_TOTAL), lambda i: (i, 0)),
        compiler_params=pltpu.CompilerParams(
            dimension_semantics=("parallel",)),
    )(x, wb, bb, wh, bh)
    return out[:M] if M_pad != M else out


# ----------------------------------------------------------------------------
# Pallas kernel 2: fused bilinear upsample (height pass + width pass), NCHW out.
#   grid=(N, H_out tiles); per step: out[n, c, h-tile] = (A_h_tile @ x[n,c]) @ A_w^T
# ----------------------------------------------------------------------------
def _upsample_kernel(x_ref, ah_ref, awt_ref, o_ref, *, ch):
    ah = ah_ref[...]                                  # (th, Hp)   bf16
    awt = awt_ref[...]                                # (Wp, W_out) bf16
    for c in range(ch):                               # small static unroll
        t = jnp.dot(ah, x_ref[0, c],
                    preferred_element_type=jnp.float32)        # (th, Wp)
        o = jnp.dot(t.astype(jnp.bfloat16), awt,
                    preferred_element_type=jnp.float32)        # (th, W_out)
        o_ref[0, c] = o.astype(o_ref.dtype)


def _bilinear_matrix(out_size, in_size):
    """1-D bilinear interpolation matrix, PyTorch align_corners=False."""
    scale = in_size / out_size
    o = np.arange(out_size)
    src = (o + 0.5) * scale - 0.5
    src = np.clip(src, 0.0, in_size - 1)
    i0 = np.floor(src).astype(np.int64)
    i1 = np.minimum(i0 + 1, in_size - 1)
    frac = (src - i0).astype(np.float32)
    A = np.zeros((out_size, in_size), np.float32)
    np.add.at(A, (o, i0), 1.0 - frac)
    np.add.at(A, (o, i1), frac)
    return A


def fused_bilinear_upsample_nchw(x_nchw_low, out_hw):
    """Bilinear (align_corners=False) upsample of a low-res NCHW slab.

    x_nchw_low: (N, C, Hp, Wp) bf16 -> (N, C, H_out, W_out) f32.  One kernel,
    lane-dense (W_out) output stores, no HBM intermediate.
    """
    Nn, C, Hp, Wp = x_nchw_low.shape
    H_out, W_out = out_hw
    a_h = jnp.asarray(_bilinear_matrix(H_out, Hp)).astype(jnp.bfloat16)
    a_wt = jnp.asarray(_bilinear_matrix(W_out, Wp).T).astype(jnp.bfloat16)

    th = _pick_h_tile(H_out)
    n_h = max(H_out // th, 1)

    return pl.pallas_call(
        functools.partial(_upsample_kernel, ch=C),
        out_shape=jax.ShapeDtypeStruct((Nn, C, H_out, W_out), jnp.float32),
        grid=(Nn, n_h),
        in_specs=[
            pl.BlockSpec((1, C, Hp, Wp), lambda n, h: (n, 0, 0, 0)),
            pl.BlockSpec((th, Hp), lambda n, h: (h, 0)),
            pl.BlockSpec((Wp, W_out), lambda n, h: (0, 0)),
        ],
        out_specs=pl.BlockSpec((1, C, th, W_out), lambda n, h: (n, 0, h, 0)),
        compiler_params=pltpu.CompilerParams(
            dimension_semantics=("parallel", "parallel")),
    )(x_nchw_low, a_h, a_wt)


# ----------------------------------------------------------------------------
# Synthetic backbone / fused heads + the wrapper forward
# ----------------------------------------------------------------------------
def init_params(key, c_in):
    k_b, k_route, *k_heads = jax.random.split(key, 2 + len(TASKS))
    params = {
        "backbone_w": jax.random.normal(
            k_b, (PATCH * PATCH * c_in, C_FEAT), jnp.float32) * 0.05,
        "backbone_b": jnp.zeros((1, C_FEAT), jnp.float32),
        "route_w": jax.random.normal(
            k_route, (C_FEAT, N_ROUTE), jnp.float32) * 0.05,
    }
    for t, kt in zip(TASKS, k_heads):
        params[f"head_{t}_w"] = jax.random.normal(
            kt, (C_FEAT, TASK_CHANNELS[t]), jnp.float32) * 0.05
        params[f"head_{t}_b"] = jnp.zeros((1, TASK_CHANNELS[t]), jnp.float32)
    return params


def _fused_head_params(params):
    """All task heads + route head as one (C_FEAT, CH_TOTAL) bf16 slab."""
    w_cols = [params[f"head_{t}_w"] for t in TASKS] + [params["route_w"]]
    b_cols = [params[f"head_{t}_b"] for t in TASKS] + [
        jnp.zeros((1, N_ROUTE), jnp.float32)]
    w = jnp.concatenate(w_cols, axis=1).astype(jnp.bfloat16)
    b = jnp.concatenate(b_cols, axis=1)
    return w, b


def backbone_and_heads(params, x_nchw):
    """Patch-embed backbone (kernel=stride=PATCH conv == matmul over patches)
    fused with all per-task 1x1-conv heads + routing head in one kernel."""
    Nn, C, H, W = x_nchw.shape
    Hp, Wp = H // PATCH, W // PATCH
    # TODO(synk): fold this patch gather into the fused kernel's BlockSpec
    # index_map (grid over (N, Hp)) to avoid materializing the patch slab.
    x = x_nchw.astype(jnp.bfloat16)
    x = jnp.transpose(x, (0, 2, 3, 1))                          # N,H,W,C
    x = x.reshape(Nn, Hp, PATCH, Wp, PATCH, C)
    x = jnp.transpose(x, (0, 1, 3, 2, 4, 5)).reshape(
        Nn * Hp * Wp, PATCH * PATCH * C)

    wb = params["backbone_w"].astype(jnp.bfloat16)
    bb = params["backbone_b"]
    wh, bh = _fused_head_params(params)
    fused = fused_backbone_heads(x, wb, bb, wh, bh)             # (M, 8) f32

    # per-task low-res logits, laid out NCHW (channels-first) for the upsample
    task_low = fused[:, :CH_TASK].reshape(Nn, Hp, Wp, CH_TASK)
    task_low_nchw = jnp.transpose(task_low, (0, 3, 1, 2)).astype(jnp.bfloat16)
    # routing: mean-pool of per-pixel route logits (tiny (M,2) reduction; an
    # in-kernel per-image accumulator would save one small XLA pass).
    route_logits = fused[:, CH_TASK:].reshape(Nn, Hp * Wp, N_ROUTE).mean(axis=1)
    info = {"route_prob": jax.nn.softmax(route_logits, axis=-1)}
    return task_low_nchw, info


def task_diffusion_mlore_forward(params, x_nchw, ground_truths,
                                 need_info=False, if_eval=True):
    """Mirrors TaskDiffusionMLoREWrapper.forward (aux_forward=False path)."""
    # TODO(synk): ground_truths / if_eval only drive training losses in the
    # original MLoRE heads; the eval forward path is what is reproduced here.
    del ground_truths, if_eval
    img_size = x_nchw.shape[-2:]
    task_low_nchw, info = backbone_and_heads(params, x_nchw)

    out_real = {}
    for key in info.keys():
        if "route" in key:
            out_real[key] = info[key]

    # one fused bilinear upsample for all tasks (channels concatenated), NCHW
    up = fused_bilinear_upsample_nchw(task_low_nchw, img_size)
    off = 0
    for t in TASKS:
        ch = TASK_CHANNELS[t]
        out_real[t] = up[:, off:off + ch]
        off += ch

    if need_info:
        return out_real, info
    return out_real


if __name__ == "__main__":
    key = jax.random.PRNGKey(0)
    k_param, k_x = jax.random.split(key)

    N, C_in, H, W = 2, 4, 16, 16
    x = jax.random.normal(k_x, (N, C_in, H, W), jnp.float32)
    ground_truths = {t: jnp.zeros((N, 1, H, W), jnp.float32) for t in TASKS}

    params = init_params(k_param, C_in)

    out, info = task_diffusion_mlore_forward(params, x, ground_truths,
                                             need_info=True, if_eval=True)
    jax.block_until_ready(out)

    # sanity checks: task outputs back at full input resolution, finite values
    assert out["semseg"].shape == (N, TASK_CHANNELS["semseg"], H, W)
    assert out["depth"].shape == (N, TASK_CHANNELS["depth"], H, W)
    assert out["route_prob"].shape == (N, len(TASKS))
    for v in out.values():
        assert bool(jnp.all(jnp.isfinite(v)))

    print("KERNEL_OK")
</pallas_src>

<mosaic_0001>
module attributes {stable_mosaic.version = 11 : i64} {
  func.func @_backbone_heads_kernel(%arg0: i32, %arg1: memref<32x64xbf16, #tpu.memory_space<vmem>>, %arg2: memref<64x128xbf16, #tpu.memory_space<vmem>>, %arg3: memref<1x128xf32, #tpu.memory_space<vmem>>, %arg4: memref<128x8xbf16, #tpu.memory_space<vmem>>, %arg5: memref<1x8xf32, #tpu.memory_space<vmem>>, %arg6: memref<32x8xf32, #tpu.memory_space<vmem>>) attributes {dimension_semantics = [#tpu.dimension_semantics<parallel>], iteration_bounds = array<i64: 1>, scalar_prefetch = 0 : i64, scratch_operands = 0 : i64, tpu.core_type = #tpu.core_type<tc>, window_params = [{transform_indices = @transform_0, window_bounds = array<i64: 32, 64>}, {pipeline_mode = #tpu.pipeline_mode<synchronous>, transform_indices = @transform_1, window_bounds = array<i64: 64, 128>}, {pipeline_mode = #tpu.pipeline_mode<synchronous>, transform_indices = @transform_2, window_bounds = array<i64: 1, 128>}, {pipeline_mode = #tpu.pipeline_mode<synchronous>, transform_indices = @transform_3, window_bounds = array<i64: 128, 8>}, {pipeline_mode = #tpu.pipeline_mode<synchronous>, transform_indices = @transform_4, window_bounds = array<i64: 1, 8>}, {transform_indices = @transform_5, window_bounds = array<i64: 32, 8>}]} {
    %c0 = arith.constant 0 : index
    %c0_0 = arith.constant 0 : index
    %0 = vector.load %arg1[%c0, %c0_0] : memref<32x64xbf16, #tpu.memory_space<vmem>>, vector<32x64xbf16>
    %c0_1 = arith.constant 0 : index
    %c0_2 = arith.constant 0 : index
    %1 = vector.load %arg2[%c0_1, %c0_2] : memref<64x128xbf16, #tpu.memory_space<vmem>>, vector<64x128xbf16>
    %cst = arith.constant dense<0.000000e+00> : vector<32x128xf32>
    %2 = tpu.matmul %0, %1, %cst {dimension_numbers = #tpu.dot_dimension_numbers<[1], [0], [0], [1], [0, 0, 1, 1], [], []>} : vector<32x64xbf16>, vector<64x128xbf16>, vector<32x128xf32> -> vector<32x128xf32>
    %c0_3 = arith.constant 0 : index
    %c0_4 = arith.constant 0 : index
    %3 = vector.load %arg3[%c0_3, %c0_4] : memref<1x128xf32, #tpu.memory_space<vmem>>, vector<1x128xf32>
    %4 = vector.broadcast %3 : vector<1x128xf32> to vector<32x128xf32>
    %5 = arith.addf %2, %4 : vector<32x128xf32>
    %cst_5 = arith.constant 0.000000e+00 : f32
    %6 = vector.broadcast %cst_5 : f32 to vector<32x128xf32>
    %7 = arith.maximumf %5, %6 : vector<32x128xf32>
    %8 = arith.truncf %7 : vector<32x128xf32> to vector<32x128xbf16>
    %c0_6 = arith.constant 0 : index
    %c0_7 = arith.constant 0 : index
    %9 = vector.load %arg4[%c0_6, %c0_7] : memref<128x8xbf16, #tpu.memory_space<vmem>>, vector<128x8xbf16>
    %cst_8 = arith.constant dense<0.000000e+00> : vector<32x8xf32>
    %10 = tpu.matmul %8, %9, %cst_8 {dimension_numbers = #tpu.dot_dimension_numbers<[1], [0], [0], [1], [0, 0, 1, 1], [], []>} : vector<32x128xbf16>, vector<128x8xbf16>, vector<32x8xf32> -> vector<32x8xf32>
    %c0_9 = arith.constant 0 : index
    %c0_10 = arith.constant 0 : index
    %11 = vector.load %arg5[%c0_9, %c0_10] : memref<1x8xf32, #tpu.memory_space<vmem>>, vector<1x8xf32>
    %12 = vector.broadcast %11 : vector<1x8xf32> to vector<32x8xf32>
    %13 = arith.addf %10, %12 : vector<32x8xf32>
    %c0_11 = arith.constant 0 : index
    %c0_12 = arith.constant 0 : index
    %14 = vector.load %arg6[%c0_11, %c0_12] : memref<32x8xf32, #tpu.memory_space<vmem>>, vector<32x8xf32>
    tpu.vector_store %arg6[%c0_11, %c0_12], %13 {strides = array<i32>} : memref<32x8xf32, #tpu.memory_space<vmem>>, vector<32x8xf32>,
    return
  }
  func.func @transform_0(%arg0: i32) -> (i32, i32) {
    %c0_i32 = arith.constant 0 : i32
    %c0_i32_0 = arith.constant 0 : i32
    return %arg0, %c0_i32 : i32, i32
  }
  func.func @transform_1(%arg0: i32) -> (i32, i32) {
    %c0_i32 = arith.constant 0 : i32
    %c0_i32_0 = arith.constant 0 : i32
    %c0_i32_1 = arith.constant 0 : i32
    return %c0_i32, %c0_i32_0 : i32, i32
  }
  func.func @transform_2(%arg0: i32) -> (i32, i32) {
    %c0_i32 = arith.constant 0 : i32
    %c0_i32_0 = arith.constant 0 : i32
    %c0_i32_1 = arith.constant 0 : i32
    return %c0_i32, %c0_i32_0 : i32, i32
  }
  func.func @transform_3(%arg0: i32) -> (i32, i32) {
    %c0_i32 = arith.constant 0 : i32
    %c0_i32_0 = arith.constant 0 : i32
    %c0_i32_1 = arith.constant 0 : i32
    return %c0_i32, %c0_i32_0 : i32, i32
  }
  func.func @transform_4(%arg0: i32) -> (i32, i32) {
    %c0_i32 = arith.constant 0 : i32
    %c0_i32_0 = arith.constant 0 : i32
    %c0_i32_1 = arith.constant 0 : i32
    return %c0_i32, %c0_i32_0 : i32, i32
  }
  func.func @transform_5(%arg0: i32) -> (i32, i32) {
    %c0_i32 = arith.constant 0 : i32
    %c0_i32_0 = arith.constant 0 : i32
    return %arg0, %c0_i32 : i32, i32
  }
}

</mosaic_0001>

<bundles_post_ra>
// kernel: tpu_custom_call.1
= control target key start
LH: loop header
LB: loop body
LE: loop exit
PB: predicated region body
PF: predicated region fallthrough
CT: control target
= control target key end

     0   :  { %vm74_vm0 = vcmask 523264   ;;  %vm256_vm1 = vcmask 64512   ;;  %s437_s1 = inlined_call_operand.vmem [shape: bf16[64,128], index: 1, kind: input, shape index: {}]   ;;  %s438_s0 = inlined_call_operand.vmem [shape: bf16[32,64], index: 0, kind: input, shape index: {}]   ;;  %s439_s3 = inlined_call_operand.vmem [shape: bf16[128,8], index: 3, kind: input, shape index: {}]   ;;  %s440_s2 = inlined_call_operand.vmem [shape: f32[1,128], index: 2, kind: input, shape index: {}]   ;;  %s441_s4 = inlined_call_operand.vmem [shape: f32[1,8], index: 4, kind: input, shape index: {}]   ;;  %s442_s5 = inlined_call_operand.vmem [shape: f32[32,8], index: 5, kind: output, shape index: {}]  }
   0x1   :  { %v331_v0 = vld [vmem:[%s437_s1 + $0x18] sm:$0xff]   ;;  %v332_v1 = vld [vmem:[%s437_s1 + $0x10] sm:$0xff]   ;;  %v333_v2 = vld [vmem:[%s437_s1 + $0x8] sm:$0xff]  }
   0x2   :  { %299 = vmatprep.subr.bf16.mxu0 %v331_v0  ;;  %v335_v3 = vld [vmem:[%s438_s0] sm:$0xff]   ;;  %v337_v4 = vld [vmem:[%s439_s3 + $0x38] sm:$0xff]   ;;  %v338_v5 = vld [vmem:[%s439_s3 + $0x30] sm:$0xff]  }
   0x3   :  { %300 = vmatpush3.bf16.msra.mxu0 %v331_v0  ;;  %307 = vmatprep.mubr.msk.bf16.mxu0 %vm74_vm0, %v335_v3  ;;  %v334_v6 = vld [vmem:[%s437_s1] sm:$0xff]   ;;  %v339_v7 = vld [vmem:[%s439_s3 + $0x28] sm:$0xff]   ;;  %v341_v10 = vld [vmem:[%s439_s3 + $0x18] sm:$0xff]  }
   0x4   :  { %301 = vmatprep.subr.bf16.mxu0 %v332_v1  ;;  %311 = vmatprep.subr.bf16.mxu1 %v337_v4  ;;  %v336_v8 = vld [vmem:[%s438_s0 + $0x8] sm:$0xff]   ;;  %v340_v9 = vld [vmem:[%s439_s3 + $0x20] sm:$0xff]   ;;  %v342_v11 = vld [vmem:[%s439_s3 + $0x10] sm:$0xff]  }
   0x5   :  { %312 = vmatpush3.bf16.msra.mxu1 %v337_v4  ;;  %v343_v12 = vld [vmem:[%s439_s3 + $0x8] sm:$0xff]   ;;  %v344_v13 = vld [vmem:[%s439_s3] sm:$0xff]  }
   0x6   :  { %313 = vmatprep.subr.bf16.mxu1 %v338_v5  ;;  %v265_v16 = vld [vmem:[%s440_s2] ss:$0 sm:$0xff] }
   0x7   :  { %302 = vmatpush3.bf16.msra.mxu0 %v332_v1  ;;  %v274_v29 = vld [vmem:[%s441_s4] ss:$0 sm:$0xff] }
   0x8   :  { %303 = vmatprep.subr.bf16.mxu0 %v333_v2 }
   0x9   :  { %314 = vmatpush3.bf16.msra.mxu1 %v338_v5 }
   0xa   :  { %315 = vmatprep.subr.bf16.mxu1 %v339_v7 }
   0xb   :  { %304 = vmatpush3.bf16.msra.mxu0 %v333_v2 }
   0xc   :  { %305 = vmatprep.subr.bf16.mxu0 %v334_v6 }
   0xd   :  { %316 = vmatpush3.bf16.msra.mxu1 %v339_v7 }
   0xe   :  { %317 = vmatprep.subr.bf16.mxu1 %v340_v9 }
   0xf   :  { %306 = vmatpush3.bf16.msra.mxu0 %v334_v6 }
  0x11   :  { %318 = vmatpush3.bf16.msra.mxu1 %v340_v9 }
  0x12   :  { %308 = vmatmul.mubr.msk.bf16.vlgmr.msra.gmra.mxu0 %vm74_vm0, %v336_v8  ;;  %319 = vmatprep.subr.bf16.mxu1 %v341_v10 }
  0x15   :  { %320 = vmatpush3.bf16.msra.mxu1 %v341_v10 }
  0x16   :  { %321 = vmatprep.subr.bf16.mxu1 %v342_v11 }
  0x19   :  { %322 = vmatpush3.bf16.msra.mxu1 %v342_v11 }
  0x1a   :  { %323 = vmatprep.subr.bf16.mxu1 %v343_v12 }
  0x1d   :  { %324 = vmatpush3.bf16.msra.mxu1 %v343_v12 }
  0x1e   :  { %325 = vmatprep.subr.bf16.mxu1 %v344_v13 }
  0x21   :  { %326 = vmatpush3.bf16.msra.mxu1 %v344_v13 }
  0xd2   :  { %v309_v14 = vpop.f32.mrf.mxu0 }
  0xd3   :  { %v124_v20 = vadd.f32 %v309_v14, %v265_v16 }
  0xd4   :  { %v115_v15 = vpop.f32.mrf.mxu0 }
  0xd5   :  { %v116_v18 = vadd.f32 %v265_v16, %v115_v15  ;;  %v132_v26 = vmax.f32 %v124_v20, 0.0 }
  0xd6   :  { %v310_v17 = vpop.f32.mrf.mxu0 }
  0xd7   :  { %v127_v19 = vadd.f32 %v310_v17, %v265_v16  ;;  %v130_v24 = vmax.f32 %v116_v18, 0.0 }
  0xd8   :  { %v118_v21 = vpop.f32.mrf.mxu0 }
  0xd9   :  { %v119_v22 = vadd.f32 %v265_v16, %v118_v21  ;;  %v133_v23 = vmax.f32 %v127_v19, 0.0 }
  0xdb   :  { %v131_v25 = vmax.f32 %v119_v22, 0.0  ;;  %v135_v28 = vpack.c.bf16 %v133_v23, %v132_v26 }
  0xdd   :  { %v134_v27 = vpack.c.bf16 %v131_v25, %v130_v24 }
  0xdf   :  { %327 = vmatprep.mubr.bf16.mxu1 %v134_v27 }
  0xe0   :  { %328 = vmatmul.mubr.bf16.vlgmr.msra.gmra.mxu1 %v135_v28 }
 0x1a0   :  { %v329_v30 = vpop.f32.mrf.mxu1 }
 0x1a1   :  { %v250_v31 = vadd.f32 %v329_v30, %v274_v29 }
 0x1a2   :  { %v241_v32 = vpop.f32.mrf.mxu1 }
 0x1a3   :  { %259 = vst.msk [vmem:[%s442_s5 + $0x10] sm:$0xff] %vm256_vm1, %v250_v31  ;;  %v242_v33 = vadd.f32 %v274_v29, %v241_v32 }
 0x1a4   :  { %v330_v34 = vpop.f32.mrf.mxu1 }
 0x1a5   :  { %257 = vst.msk [vmem:[%s442_s5] sm:$0xff] %vm256_vm1, %v242_v33  ;;  %v253_v35 = vadd.f32 %v330_v34, %v274_v29 }
 0x1a6   :  { %v244_v36 = vpop.f32.mrf.mxu1 }
 0x1a7   :  { %260 = vst.msk [vmem:[%s442_s5 + $0x18] sm:$0xff] %vm256_vm1, %v253_v35  ;;  %v245_v37 = vadd.f32 %v274_v29, %v244_v36 }
 0x1a9   :  { %258 = vst.msk [vmem:[%s442_s5 + $0x8] sm:$0xff] %vm256_vm1, %v245_v37 }

</bundles_post_ra>
